<compile_context>
chip_gen: v5e
topology: v5e:2x2
jax: 0.10.0
libtpu: 0.0.40
codegen_flags: <defaults>
</compile_context>

<pallas_src>
import jax
import jax.numpy as jnp
from jax import lax
from jax.experimental import pallas as pl
from jax.experimental.pallas import tpu as pltpu


_SMALL_BYPASS_BYTES = 256 * 1024      # below this, skip pallas_call overhead
_TARGET_TILE_BYTES = 2 * 1024 * 1024  # per input buffer, native dtype
_MAX_TILE_C = 1024                    # lane-dim tile for very wide layers


def _choose_tiles(out_f: int, in_f: int, itemsize: int):
    """Pick (tile_r, tile_c) respecting the (8,128)/full-dim block rule."""
    # Column (lane) tile: full width for moderate layers, 1024 for wide ones.
    if in_f <= 2 * _MAX_TILE_C:
        tile_c = in_f                      # full array dim -> always legal
    else:
        tile_c = _MAX_TILE_C               # multiple of 128; last block masked

    # Row (sublane) tile sized to the VMEM budget; keep packed-dtype alignment.
    sub = 8 * max(1, 4 // itemsize)        # 8 for f32, 16 for bf16, 32 for int8
    max_rows = max(sub, _TARGET_TILE_BYTES // max(1, tile_c * itemsize))
    if out_f <= max_rows:
        tile_r = out_f                     # full array dim -> always legal
    else:
        tile_r = max(sub, (max_rows // sub) * sub)
    return tile_r, tile_c


def _make_sumsq_kernel(out_f: int, in_f: int, tile_r: int, tile_c: int):
    need_row_mask = out_f % tile_r != 0
    need_col_mask = in_f % tile_c != 0

    def kernel(w_ref, out_ref, acc_ref):
        i = pl.program_id(0)      # row tile   ("parallel")
        j = pl.program_id(1)      # col tile   (reduction axis, "arbitrary")

        @pl.when(j == 0)
        def _init():
            acc_ref[...] = jnp.zeros_like(acc_ref)

        blk = w_ref[...].astype(jnp.float32)

        # Zero the out-of-bounds tail of edge blocks.  Trace-time switch: no
        # mask code is emitted when the tiles divide the array evenly.
        if need_row_mask or need_col_mask:
            mask = None
            if need_row_mask:
                rows = i * tile_r + lax.broadcasted_iota(
                    jnp.int32, (tile_r, tile_c), 0)
                mask = rows < out_f
            if need_col_mask:
                cols = j * tile_c + lax.broadcasted_iota(
                    jnp.int32, (tile_r, tile_c), 1)
                cmask = cols < in_f
                mask = cmask if mask is None else (mask & cmask)
            blk = jnp.where(mask, blk, 0.0)

        # Pure-VPU elementwise accumulate each step.
        acc_ref[...] += blk * blk

        # Single cross-lane reduce + scalar store per row tile.
        @pl.when(j == pl.num_programs(1) - 1)
        def _finalize():
            out_ref[0, 0] = jnp.sum(acc_ref[...])

    return kernel


def weight_penalty_pallas(w: jax.Array, *, tile_r=None, tile_c=None,
                          force_pallas: bool = False) -> jax.Array:
    """||w||_F ** 2 for a 2-D weight matrix via a Pallas reduction kernel."""
    assert w.ndim == 2, "nn.Linear weight is 2D (out_features, in_features)"
    out_f, in_f = w.shape
    itemsize = jnp.dtype(w.dtype).itemsize

    if not force_pallas and out_f * in_f * itemsize < _SMALL_BYPASS_BYTES:
        # Tiny weight: pallas_call launch overhead dominates and the custom
        # call blocks fusion with surrounding loss terms; let XLA handle it.
        return jnp.sum(jnp.square(w.astype(jnp.float32)))

    auto_r, auto_c = _choose_tiles(out_f, in_f, itemsize)
    tile_r = auto_r if tile_r is None else tile_r
    tile_c = auto_c if tile_c is None else tile_c

    n_row = pl.cdiv(out_f, tile_r)
    n_col = pl.cdiv(in_f, tile_c)

    kernel = _make_sumsq_kernel(out_f, in_f, tile_r, tile_c)

    partials = pl.pallas_call(
        kernel,
        out_shape=jax.ShapeDtypeStruct((n_row, 1), jnp.float32),
        grid_spec=pltpu.PrefetchScalarGridSpec(
            num_scalar_prefetch=0,
            grid=(n_row, n_col),
            in_specs=[
                # Weight stays in its native dtype for the DMA (bf16 halves
                # HBM traffic); upcast happens inside the kernel.
                pl.BlockSpec((tile_r, tile_c), lambda i, j: (i, j)),
            ],
            out_specs=pl.BlockSpec(
                (1, 1), lambda i, j: (i, 0), memory_space=pltpu.SMEM),
            scratch_shapes=[pltpu.VMEM((tile_r, tile_c), jnp.float32)],
        ),
        compiler_params=pltpu.CompilerParams(
            # Rows are independent (per-row-tile partial outputs) -> parallel
            # (megacore sharding on v7x).  Column axis is the reduction into
            # the resident accumulator -> arbitrary, kept last.
            dimension_semantics=("parallel", "arbitrary"),
        ),
    )(w)
    # Sum the per-row-tile partial sums (cheap, fused by XLA).
    return jnp.sum(partials)


class WeightPenalty:
    """JAX/Pallas equivalent of the PyTorch WeightPenalty module."""

    def __init__(self, norm: str = "l2"):
        self.norm = norm

    def __call__(self, params: dict) -> jax.Array:
        # Glue: find the FIRST Linear layer's weight (insertion order mimics
        # `model.modules()` traversal order + the `break`).
        for name, p in params.items():
            if name.endswith("linear.weight"):
                if self.norm == "l2":
                    return weight_penalty_pallas(p)
                raise NotImplementedError
        raise ValueError("no Linear layer found in params")


if __name__ == "__main__":
    key = jax.random.PRNGKey(0)
    k1, k2, k3, k4 = jax.random.split(key, 4)

    # Small synthetic "model": first Linear has in_features=128, out=32.
    params = {
        "fc1.linear.weight": jax.random.normal(k1, (32, 128), dtype=jnp.float32),
        "fc2.linear.weight": jax.random.normal(k2, (16, 32), dtype=jnp.float32),
    }
    penalty_fn = WeightPenalty(norm="l2")
    loss = jax.block_until_ready(penalty_fn(params))
    ref = jnp.sum(params["fc1.linear.weight"].astype(jnp.float32) ** 2)
    assert jnp.allclose(loss, ref, rtol=1e-5, atol=1e-5), (loss, ref)

    # Exercise the Pallas kernel explicitly (the tiny module weight above takes
    # the small-array XLA bypass by design).
    # 1) f32, single full-dim block.
    w_a = params["fc1.linear.weight"]
    got_a = jax.block_until_ready(weight_penalty_pallas(w_a, force_pallas=True))
    ref_a = jnp.sum(w_a.astype(jnp.float32) ** 2)
    assert jnp.allclose(got_a, ref_a, rtol=1e-5, atol=1e-5), (got_a, ref_a)

    # 2) Ragged rows AND cols with explicit tiles -> both edge masks active.
    w_b = jax.random.normal(k3, (100, 384), dtype=jnp.float32)
    got_b = jax.block_until_ready(
        weight_penalty_pallas(w_b, tile_r=32, tile_c=256, force_pallas=True))
    ref_b = jnp.sum(w_b.astype(jnp.float32) ** 2)
    assert jnp.allclose(got_b, ref_b, rtol=1e-4, atol=1e-4), (got_b, ref_b)

    # 3) bf16 wide layer -> column tiling with a masked last column tile.
    w_c = jax.random.normal(k4, (96, 2500), dtype=jnp.float32).astype(jnp.bfloat16)
    got_c = jax.block_until_ready(weight_penalty_pallas(w_c, force_pallas=True))
    ref_c = jnp.sum(w_c.astype(jnp.float32) ** 2)
    assert jnp.allclose(got_c, ref_c, rtol=1e-3, atol=1e-2), (got_c, ref_c)

    print("KERNEL_OK")
</pallas_src>

<mosaic_0001>
module attributes {stable_mosaic.version = 11 : i64} {
  func.func @kernel(%arg0: i32, %arg1: i32, %arg2: memref<32x128xf32, #tpu.memory_space<vmem>>, %arg3: memref<1x1xf32, #tpu.memory_space<smem>>, %arg4: memref<32x128xf32, #tpu.memory_space<vmem>>) attributes {dimension_semantics = [#tpu.dimension_semantics<parallel>, #tpu.dimension_semantics<arbitrary>], iteration_bounds = array<i64: 1, 1>, scalar_prefetch = 0 : i64, scratch_operands = 1 : i64, tpu.core_type = #tpu.core_type<tc>, window_params = [{transform_indices = @transform_0, window_bounds = array<i64: 32, 128>}, {transform_indices = @transform_1, window_bounds = array<i64: 1, 1>}]} {
    %c0_i32 = arith.constant 0 : i32
    %0 = arith.cmpi eq, %arg1, %c0_i32 : i32
    %1 = arith.extui %0 : i1 to i32
    %c0_i32_0 = arith.constant 0 : i32
    %2 = arith.cmpi ne, %1, %c0_i32_0 : i32
    scf.if %2 {
      %cst = arith.constant 0.000000e+00 : f32
      %11 = vector.broadcast %cst : f32 to vector<32x128xf32>
      %c0_8 = arith.constant 0 : index
      %c0_9 = arith.constant 0 : index
      %12 = vector.load %arg4[%c0_8, %c0_9] : memref<32x128xf32, #tpu.memory_space<vmem>>, vector<32x128xf32>
      tpu.vector_store %arg4[%c0_8, %c0_9], %11 {strides = array<i32>} : memref<32x128xf32, #tpu.memory_space<vmem>>, vector<32x128xf32>,
    } else {
    }
    %c0 = arith.constant 0 : index
    %c0_1 = arith.constant 0 : index
    %3 = vector.load %arg2[%c0, %c0_1] : memref<32x128xf32, #tpu.memory_space<vmem>>, vector<32x128xf32>
    %c0_2 = arith.constant 0 : index
    %c0_3 = arith.constant 0 : index
    %4 = vector.load %arg4[%c0_2, %c0_3] : memref<32x128xf32, #tpu.memory_space<vmem>>, vector<32x128xf32>
    %5 = arith.mulf %3, %3 : vector<32x128xf32>
    %6 = arith.addf %4, %5 : vector<32x128xf32>
    %c0_4 = arith.constant 0 : index
    %c0_5 = arith.constant 0 : index
    %7 = vector.load %arg4[%c0_4, %c0_5] : memref<32x128xf32, #tpu.memory_space<vmem>>, vector<32x128xf32>
    tpu.vector_store %arg4[%c0_4, %c0_5], %6 {strides = array<i32>} : memref<32x128xf32, #tpu.memory_space<vmem>>, vector<32x128xf32>,
    %c0_i32_6 = arith.constant 0 : i32
    %8 = arith.cmpi eq, %arg1, %c0_i32_6 : i32
    %9 = arith.extui %8 : i1 to i32
    %c0_i32_7 = arith.constant 0 : i32
    %10 = arith.cmpi ne, %9, %c0_i32_7 : i32
    scf.if %10 {
      %c0_8 = arith.constant 0 : index
      %c0_9 = arith.constant 0 : index
      %11 = vector.load %arg4[%c0_8, %c0_9] : memref<32x128xf32, #tpu.memory_space<vmem>>, vector<32x128xf32>
      %12 = vector.shape_cast %11 : vector<32x128xf32> to vector<1x32x128xf32>
      %cst = arith.constant dense<0.000000e+00> : vector<1xf32>
      %13 = vector.multi_reduction <add>, %12, %cst [1, 2] : vector<1x32x128xf32> to vector<1xf32>
      %14 = vector.shape_cast %13 : vector<1xf32> to vector<1x1x1xf32>
      %15 = vector.extract %14[0, 0, 0] : f32 from vector<1x1x1xf32>
      %c0_10 = arith.constant 0 : index
      %c0_11 = arith.constant 0 : index
      %16 = memref.load %arg3[%c0_10, %c0_11] : memref<1x1xf32, #tpu.memory_space<smem>>
      memref.store %15, %arg3[%c0_10, %c0_11] : memref<1x1xf32, #tpu.memory_space<smem>>
    } else {
    }
    return
  }
  func.func @transform_0(%arg0: i32, %arg1: i32) -> (i32, i32) {
    %c0_i32 = arith.constant 0 : i32
    return %arg0, %arg1 : i32, i32
  }
  func.func @transform_1(%arg0: i32, %arg1: i32) -> (i32, i32) {
    %c0_i32 = arith.constant 0 : i32
    %c0_i32_0 = arith.constant 0 : i32
    return %arg0, %c0_i32 : i32, i32
  }
}

</mosaic_0001>

<bundles_post_ra>
// kernel: tpu_custom_call.1
= control target key start
LH: loop header
LB: loop body
LE: loop exit
PB: predicated region body
PF: predicated region fallthrough
CT: control target
= control target key end

     0   :  { %6 = vsyncpa [#allocation4], 0  ;;  %s156_s0 = inlined_call_operand.hbm [shape: f32[32,128], index: 0, kind: input, shape index: {}]   ;;  %s157_s1 = inlined_call_operand.hbm [shape: f32[1,1], index: 1, kind: output, shape index: {}]  }
   0x1   :  { %7 = vsyncpa [#allocation5], 0  ;;  %s12_s8 = sshll.u32 %s156_s0, 4  ;;  %s136_s9 = smov [#allocation3]   ;;  %s13_s8 = int_to_ptr.hbm [resolvable:$true] %s12_s8 }
   0x2   :  { %s14_s10 = sshll.u32 %s136_s9, 4  ;;  %s137_s11 = smov 128   ;;  %s15_s10 = int_to_ptr.vmem [resolvable:$true] %s14_s10 }
   0x3   :  { %s138_s12 = smov 8  }
   0x4   :  { %20 = dma.hbm_to_vmem [thread:$0]  %s13_s8, 512, %s15_s10, [#allocation4], %s137_s11, %s137_s11, %s138_s12  }
   0x5   :  { %132 = dma.done.wait [#allocation4], 512  }
   0x6   :  { %133 = vsyncadd [#allocation4], 4294966784  ;;  %v33_v0 = vld [vmem:[#allocation3] sm:$0xff]  ;;  %v34_v1 = vld [vmem:[#allocation3 + $0x8] sm:$0xff]  ;;  %s79_s14 = sshll.u32 %s157_s1, 4  ;;  %s139_s16 = smov [#allocation6]   ;;  %s80_s14 = int_to_ptr.hbm [resolvable:$true] %s79_s14 }
   0x7   :  { %v35_v2 = vld [vmem:[#allocation3 + $0x10] sm:$0xff]  ;;  %v36_v3 = vld [vmem:[#allocation3 + $0x18] sm:$0xff]  ;;  %v41_v4 = vmul.f32 %v33_v0, %v33_v0  ;;  %v42_v5 = vmul.f32 %v34_v1, %v34_v1 }
   0x8   :  { %v43_v6 = vmul.f32 %v35_v2, %v35_v2  ;;  %v44_v7 = vmul.f32 %v36_v3, %v36_v3 }
   0x9   :  { %v60_v8 = vadd.f32 %v42_v5, %v41_v4 }
   0xb   :  { %v61_v9 = vadd.f32 %v60_v8, %v43_v6 }
   0xd   :  { %v62_v10 = vadd.f32 %v61_v9, %v44_v7 }
   0xf   :  { %63 = vadd.xlane.f32.xlu0 %v62_v10 }
  0x82   :  { %v64_v11 = vpop.xlane.xlu0 %63 }
  0x83   :  { %v65_v12 = vrot.slane %v64_v11, 4 }
  0x85   :  { %v66_v13 = vadd.f32 %v65_v12, %v64_v11 }
  0x87   :  { %v67_v14 = vrot.slane %v66_v13, 2 }
  0x89   :  { %v68_v15 = vadd.f32 %v67_v14, %v66_v13 }
  0x8b   :  { %v69_v16 = vrot.slane %v68_v15, 1 }
  0x8d   :  { %v70_v17 = vadd.f32 %v69_v16, %v68_v15 }
  0x8f   :  { %90 = vpush %v70_v17 }
  0xc0   :  { %s91_s15 = spop %90 }
  0xc1   :  { %73 = sst [smem:[#allocation6]] %s91_s15 }
  0xc2   :  { %82 = dma.smem_to_hbm %s139_s16, 16, %s80_s14, [#allocation5]  }
  0xc3   :  { %134 = dma.done.wait [#allocation5], 16  }
  0xc4   :  { %135 = vsyncadd [#allocation5], 4294967280 }
  0xc5   :  { %87 = sfence }
  0xc6   :  { %88 = vsyncpa [#allocation4], 1 }
  0xc7   :  { %89 = vsyncpa [#allocation5], 1 }

</bundles_post_ra>
